<compile_context>
chip_gen: v7x
topology: tpu7x:2x2x1
jax: 0.10.0
libtpu: 0.0.40
codegen_flags: <defaults>
</compile_context>

<pallas_src>
import functools

import jax
import jax.numpy as jnp
from jax.experimental import pallas as pl
from jax.experimental.pallas import tpu as pltpu


def _round_up(a, m):
    return (a + m - 1) // m * m


def _lstm_kernel(xproj_ref, whh_ref, out_ref, c_out_ref, h_sc, c_sc, *,
                 time_block, g_pack, hidden_size, seq_len):
    """One grid step = `time_block` LSTM timesteps for one batch tile.

    xproj_ref : (time_block, bb, 4H)        x_t @ W_ih^T + (b_ih+b_hh), fused gates
    whh_ref   : (H, 4H)                     W_hh^T (fused gate axis), VMEM resident
    out_ref   : (bb, time_block//g, g*H)    g consecutive timesteps packed into lanes
    c_out_ref : (bb, H)                     cell state at t == seq_len-1
    h_sc,c_sc : (bb, H) f32                 recurrent state carried across time blocks
    """
    H = hidden_size
    ti = pl.program_id(1)

    # h0 = c0 = 0 (PyTorch default). Reset at the start of every batch tile's
    # time sweep (time is the innermost grid axis).
    @pl.when(ti == 0)
    def _():
        h_sc[...] = jnp.zeros_like(h_sc)
        c_sc[...] = jnp.zeros_like(c_sc)

    f32 = jnp.float32
    h = h_sc[...]
    c = c_sc[...]
    n_groups = time_block // g_pack

    # TODO(synk): for very small H (g_pack large) switch the group loop to a
    # lax.fori_loop with partial unroll to bound code size.
    for grp in range(n_groups):
        hs = []
        for j in range(g_pack):
            t_local = grp * g_pack + j
            pre_x = xproj_ref[t_local].astype(f32)              # (bb, 4H)
            # Load W_hh^T just-in-time (don't pin it in vregs across the whole
            # unrolled loop; VMEM loads are cheap — 3 vld slots/cycle).
            whh = whh_ref[...]                                  # (H, 4H)
            gates = pre_x + jnp.dot(h.astype(whh.dtype), whh,
                                    preferred_element_type=f32)  # one fused MXU dot
            i_g = jax.nn.sigmoid(gates[:, 0 * H:1 * H])
            f_g = jax.nn.sigmoid(gates[:, 1 * H:2 * H])
            g_g = jnp.tanh(gates[:, 2 * H:3 * H])
            o_g = jax.nn.sigmoid(gates[:, 3 * H:4 * H])
            c = f_g * c + i_g * g_g
            h = o_g * jnp.tanh(c)
            hs.append(h)

            # Capture the true final cell state (robust to time padding); the
            # resident c_out buffer keeps this value until its final writeback.
            @pl.when(ti * time_block + t_local == seq_len - 1)
            def _(c_cur=c):
                c_out_ref[...] = c_cur.astype(c_out_ref.dtype)

        packed = hs[0] if g_pack == 1 else jnp.concatenate(hs, axis=-1)
        out_ref[:, grp, :] = packed.astype(out_ref.dtype)        # lane-dense store

    # Carry recurrent state to the next time block.
    h_sc[...] = h
    c_sc[...] = c


def lstm_encoder_forward(x, w_ih, w_hh, b_ih, b_hh, *,
                         time_block=8, batch_block=None,
                         matmul_dtype=jnp.bfloat16):
    """x: (B, T, D_in) -> (outputs (B,T,H), hidden (1,B,H), cell (1,B,H)).

    matmul_dtype: dtype of xproj storage and the recurrent-matmul operands.
    bf16 (default) is MXU-native; pass jnp.float32 for strict fidelity.
    """
    B, T, D = x.shape
    H = w_hh.shape[1]                     # w_hh: (4H, H)
    f32 = jnp.float32

    # --- batch tiling (parallel grid axis; feeds both TensorCores on v7x).
    if batch_block is None or batch_block >= B:
        bb = B
    else:
        bb = batch_block
        if B % bb != 0 or (bb % 8 != 0 and bb != B):
            raise ValueError("batch_block must divide B and be a multiple of 8")

    # --- time packing / tiling.
    # g consecutive timesteps are packed into the 128-lane dim of each output
    # block when H < 128 so every output store is a full-lane vst.
    g = 128 // H if (H < 128 and 128 % H == 0) else 1
    tb_unit = 8 * g                        # keeps packed out-block sublane dim % 8 == 0
    tb_req = _round_up(max(time_block, tb_unit), tb_unit)
    if _round_up(T, g) <= tb_req:
        tb = _round_up(T, g)               # single time block (block dim == full dim)
    else:
        tb = tb_req
    T_pad = _round_up(T, tb)

    # Hoisted input projection: one big MXU-friendly matmul, landing directly in
    # the kernel's (T, B, 4H) layout. Only the small (B,T,D) tensor is
    # transposed; the 4x-larger projected tensor is never transposed by XLA.
    x_tbd = jnp.transpose(x, (1, 0, 2)).astype(f32)             # (T, B, D)
    w_ih_t = w_ih.astype(f32).T                                 # (D, 4H), gate order i,f,g,o
    bias = (b_ih + b_hh).astype(f32)
    xproj = (x_tbd @ w_ih_t + bias).astype(matmul_dtype)        # (T, B, 4H)
    if T_pad > T:
        xproj = jnp.pad(xproj, ((0, T_pad - T), (0, 0), (0, 0)))

    # Recurrent weights as one fused lane-dense (H, 4H) slab = W_hh^T.
    whh_all = w_hh.astype(f32).T.astype(matmul_dtype)           # (H, 4H)

    kernel = functools.partial(_lstm_kernel, time_block=tb, g_pack=g,
                               hidden_size=H, seq_len=T)

    # Rough resident-VMEM estimate (double-buffered xproj/out blocks + weights +
    # state); only raise the scoped limit when blocks actually get big
    # (v7x: 64 MiB physical / 32 MiB scoped default).
    xp_bytes = jnp.dtype(matmul_dtype).itemsize
    est = (2 * tb * bb * 4 * H * xp_bytes        # xproj double buffer
           + 2 * bb * tb * H * 4                 # packed-output double buffer
           + H * 4 * H * xp_bytes                # W_hh^T resident
           + 2 * bb * H * 4)                     # h/c scratch
    vmem_limit = (int(min(2 * est, 96 * 1024 * 1024))
                  if est > 24 * 1024 * 1024 else None)

    out_packed, c_n = pl.pallas_call(
        kernel,
        out_shape=(
            jax.ShapeDtypeStruct((B, T_pad // g, g * H), f32),
            jax.ShapeDtypeStruct((B, H), f32),
        ),
        grid=(B // bb, T_pad // tb),
        in_specs=[
            pl.BlockSpec((tb, bb, 4 * H), lambda b, i: (i, b, 0)),   # xproj block
            pl.BlockSpec((H, 4 * H), lambda b, i: (0, 0)),           # W_hh^T resident
        ],
        out_specs=(
            pl.BlockSpec((bb, tb // g, g * H), lambda b, i: (b, i, 0)),  # packed outputs
            pl.BlockSpec((bb, H), lambda b, i: (b, 0)),                  # final cell
        ),
        scratch_shapes=[
            pltpu.VMEM((bb, H), f32),   # h state (carried across time blocks)
            pltpu.VMEM((bb, H), f32),   # c state (carried across time blocks)
        ],
        compiler_params=pltpu.CompilerParams(
            dimension_semantics=("parallel", "arbitrary"),   # batch ∥, time serial
            vmem_limit_bytes=vmem_limit),
    )(xproj, whh_all)

    # (B, T_pad//g, g*H) -> (B, T_pad, H) is a free, contiguous reshape.
    outputs = out_packed.reshape(B, T_pad, H)[:, :T, :]
    hidden = outputs[:, T - 1, :][None, :, :]     # (1, B, H) = last-step h
    cell = c_n[None, :, :]                        # (1, B, H)
    return outputs, hidden, cell


def _reference_lstm(x, w_ih, w_hh, b_ih, b_hh):
    """Pure-JAX f32 reference (mirrors torch.nn.LSTM, batch_first=True)."""
    B, T, D = x.shape
    H = w_hh.shape[1]
    h = jnp.zeros((B, H), jnp.float32)
    c = jnp.zeros((B, H), jnp.float32)
    outs = []
    for t in range(T):
        gg = x[:, t, :] @ w_ih.T + h @ w_hh.T + b_ih + b_hh
        i_g = jax.nn.sigmoid(gg[:, 0 * H:1 * H])
        f_g = jax.nn.sigmoid(gg[:, 1 * H:2 * H])
        g_g = jnp.tanh(gg[:, 2 * H:3 * H])
        o_g = jax.nn.sigmoid(gg[:, 3 * H:4 * H])
        c = f_g * c + i_g * g_g
        h = o_g * jnp.tanh(c)
        outs.append(h)
    outputs = jnp.stack(outs, axis=1)
    return outputs, h[None], c[None]


if __name__ == "__main__":
    import numpy as np

    # Small shapes consistent with the module: nn.LSTM(input_size, hidden_size)
    B, T, D_IN, H = 2, 8, 16, 32

    key = jax.random.PRNGKey(0)
    k_x, k_wih, k_whh, k_bih, k_bhh = jax.random.split(key, 5)

    bound = 1.0 / np.sqrt(H)
    x = jax.random.normal(k_x, (B, T, D_IN), dtype=jnp.float32)
    w_ih = jax.random.uniform(k_wih, (4 * H, D_IN), minval=-bound, maxval=bound)
    w_hh = jax.random.uniform(k_whh, (4 * H, H), minval=-bound, maxval=bound)
    b_ih = jax.random.uniform(k_bih, (4 * H,), minval=-bound, maxval=bound)
    b_hh = jax.random.uniform(k_bhh, (4 * H,), minval=-bound, maxval=bound)

    ref_out, ref_h, ref_c = _reference_lstm(x, w_ih, w_hh, b_ih, b_hh)

    # 1) Strict-fidelity path (f32 xproj + f32 recurrent matmul).
    out32, hid32, cell32 = jax.block_until_ready(
        lstm_encoder_forward(x, w_ih, w_hh, b_ih, b_hh,
                             matmul_dtype=jnp.float32))
    np.testing.assert_allclose(np.asarray(out32), np.asarray(ref_out),
                               rtol=1e-5, atol=1e-5)
    np.testing.assert_allclose(np.asarray(hid32), np.asarray(ref_h),
                               rtol=1e-5, atol=1e-5)
    np.testing.assert_allclose(np.asarray(cell32), np.asarray(ref_c),
                               rtol=1e-5, atol=1e-5)

    # 2) Default performance path (bf16 xproj + bf16 MXU operands, f32 gate math).
    outputs, hidden, cell = jax.block_until_ready(
        lstm_encoder_forward(x, w_ih, w_hh, b_ih, b_hh))
    np.testing.assert_allclose(np.asarray(outputs), np.asarray(ref_out),
                               rtol=5e-2, atol=5e-2)
    np.testing.assert_allclose(np.asarray(hidden), np.asarray(ref_h),
                               rtol=5e-2, atol=5e-2)
    np.testing.assert_allclose(np.asarray(cell), np.asarray(ref_c),
                               rtol=5e-2, atol=5e-2)

    assert outputs.shape == (B, T, H)
    assert hidden.shape == (1, B, H)
    assert cell.shape == (1, B, H)
    print("KERNEL_OK")
</pallas_src>

<mosaic_0001>
module attributes {stable_mosaic.version = 11 : i64} {
  func.func @_lstm_kernel(%arg0: i32, %arg1: i32, %arg2: memref<8x2x128xf32, #tpu.memory_space<vmem>>, %arg3: memref<32x128xf32, #tpu.memory_space<vmem>>, %arg4: memref<2x2x128xf32, #tpu.memory_space<vmem>>, %arg5: memref<2x32xf32, #tpu.memory_space<vmem>>, %arg6: memref<2x32xf32, #tpu.memory_space<vmem>>, %arg7: memref<2x32xf32, #tpu.memory_space<vmem>>) attributes {dimension_semantics = [#tpu.dimension_semantics<parallel>, #tpu.dimension_semantics<arbitrary>], iteration_bounds = array<i64: 1, 1>, scalar_prefetch = 0 : i64, scratch_operands = 2 : i64, tpu.core_type = #tpu.core_type<tc>, window_params = [{transform_indices = @transform_0, window_bounds = array<i64: 8, 2, 128>}, {pipeline_mode = #tpu.pipeline_mode<synchronous>, transform_indices = @transform_1, window_bounds = array<i64: 32, 128>}, {transform_indices = @transform_2, window_bounds = array<i64: 2, 2, 128>}, {transform_indices = @transform_3, window_bounds = array<i64: 2, 32>}]} {
    %c0_i32 = arith.constant 0 : i32
    %0 = arith.cmpi eq, %arg1, %c0_i32 : i32
    %1 = arith.extui %0 : i1 to i32
    %c0_i32_0 = arith.constant 0 : i32
    %2 = arith.cmpi ne, %1, %c0_i32_0 : i32
    scf.if %2 {
      %cst_102 = arith.constant 0.000000e+00 : f32
      %295 = vector.broadcast %cst_102 : f32 to vector<2x32xf32>
      %c0_103 = arith.constant 0 : index
      %c0_104 = arith.constant 0 : index
      %296 = vector.load %arg6[%c0_103, %c0_104] : memref<2x32xf32, #tpu.memory_space<vmem>>, vector<2x32xf32>
      tpu.vector_store %arg6[%c0_103, %c0_104], %295 {strides = array<i32>} : memref<2x32xf32, #tpu.memory_space<vmem>>, vector<2x32xf32>,
      %cst_105 = arith.constant 0.000000e+00 : f32
      %297 = vector.broadcast %cst_105 : f32 to vector<2x32xf32>
      %c0_106 = arith.constant 0 : index
      %c0_107 = arith.constant 0 : index
      %298 = vector.load %arg7[%c0_106, %c0_107] : memref<2x32xf32, #tpu.memory_space<vmem>>, vector<2x32xf32>
      tpu.vector_store %arg7[%c0_106, %c0_107], %297 {strides = array<i32>} : memref<2x32xf32, #tpu.memory_space<vmem>>, vector<2x32xf32>,
    } else {
    }
    %c0 = arith.constant 0 : index
    %c0_1 = arith.constant 0 : index
    %3 = vector.load %arg6[%c0, %c0_1] : memref<2x32xf32, #tpu.memory_space<vmem>>, vector<2x32xf32>
    %c0_2 = arith.constant 0 : index
    %c0_3 = arith.constant 0 : index
    %4 = vector.load %arg7[%c0_2, %c0_3] : memref<2x32xf32, #tpu.memory_space<vmem>>, vector<2x32xf32>
    %c0_4 = arith.constant 0 : index
    %c0_5 = arith.constant 0 : index
    %c0_6 = arith.constant 0 : index
    %5 = vector.load %arg2[%c0_4, %c0_5, %c0_6] : memref<8x2x128xf32, #tpu.memory_space<vmem>>, vector<1x2x128xf32>
    %6 = vector.shape_cast %5 : vector<1x2x128xf32> to vector<2x128xf32>
    %c0_7 = arith.constant 0 : index
    %c0_8 = arith.constant 0 : index
    %7 = vector.load %arg3[%c0_7, %c0_8] : memref<32x128xf32, #tpu.memory_space<vmem>>, vector<32x128xf32>
    %cst = arith.constant dense<0.000000e+00> : vector<2x128xf32>
    %8 = tpu.matmul %3, %7, %cst {dimension_numbers = #tpu.dot_dimension_numbers<[1], [0], [0], [1], [0, 0, 1, 1], [], []>} : vector<2x32xf32>, vector<32x128xf32>, vector<2x128xf32> -> vector<2x128xf32>
    %9 = arith.addf %6, %8 : vector<2x128xf32>
    %10 = vector.extract_strided_slice %9 {offsets = [0, 0], sizes = [2, 32], strides = [1, 1]} : vector<2x128xf32> to vector<2x32xf32>
    %11 = arith.negf %10 : vector<2x32xf32>
    %12 = math.exp %11 : vector<2x32xf32>
    %cst_9 = arith.constant 1.000000e+00 : f32
    %13 = vector.broadcast %cst_9 : f32 to vector<2x32xf32>
    %14 = arith.addf %13, %12 : vector<2x32xf32>
    %15 = arith.divf %13, %14 : vector<2x32xf32>
    %16 = vector.extract_strided_slice %9 {offsets = [0, 32], sizes = [2, 32], strides = [1, 1]} : vector<2x128xf32> to vector<2x32xf32>
    %17 = arith.negf %16 : vector<2x32xf32>
    %18 = math.exp %17 : vector<2x32xf32>
    %cst_10 = arith.constant 1.000000e+00 : f32
    %19 = vector.broadcast %cst_10 : f32 to vector<2x32xf32>
    %20 = arith.addf %19, %18 : vector<2x32xf32>
    %21 = arith.divf %19, %20 : vector<2x32xf32>
    %22 = vector.extract_strided_slice %9 {offsets = [0, 64], sizes = [2, 32], strides = [1, 1]} : vector<2x128xf32> to vector<2x32xf32>
    %23 = math.tanh %22 : vector<2x32xf32>
    %24 = vector.extract_strided_slice %9 {offsets = [0, 96], sizes = [2, 32], strides = [1, 1]} : vector<2x128xf32> to vector<2x32xf32>
    %25 = arith.negf %24 : vector<2x32xf32>
    %26 = math.exp %25 : vector<2x32xf32>
    %cst_11 = arith.constant 1.000000e+00 : f32
    %27 = vector.broadcast %cst_11 : f32 to vector<2x32xf32>
    %28 = arith.addf %27, %26 : vector<2x32xf32>
    %29 = arith.divf %27, %28 : vector<2x32xf32>
    %30 = arith.mulf %21, %4 : vector<2x32xf32>
    %31 = arith.mulf %15, %23 : vector<2x32xf32>
    %32 = arith.addf %30, %31 : vector<2x32xf32>
    %33 = math.tanh %32 : vector<2x32xf32>
    %34 = arith.mulf %29, %33 : vector<2x32xf32>
    %c8_i32 = arith.constant 8 : i32
    %35 = arith.muli %arg1, %c8_i32 : i32
    %c0_i32_12 = arith.constant 0 : i32
    %36 = arith.addi %35, %c0_i32_12 : i32
    %c7_i32 = arith.constant 7 : i32
    %37 = arith.cmpi eq, %36, %c7_i32 : i32
    %38 = arith.extui %37 : i1 to i32
    %c0_i32_13 = arith.constant 0 : i32
    %39 = arith.cmpi ne, %38, %c0_i32_13 : i32
    scf.if %39 {
      %c0_102 = arith.constant 0 : index
      %c0_103 = arith.constant 0 : index
      %295 = vector.load %arg5[%c0_102, %c0_103] : memref<2x32xf32, #tpu.memory_space<vmem>>, vector<2x32xf32>
      tpu.vector_store %arg5[%c0_102, %c0_103], %32 {strides = array<i32>} : memref<2x32xf32, #tpu.memory_space<vmem>>, vector<2x32xf32>,
    } else {
    }
    %c1 = arith.constant 1 : index
    %c0_14 = arith.constant 0 : index
    %c0_15 = arith.constant 0 : index
    %40 = vector.load %arg2[%c1, %c0_14, %c0_15] : memref<8x2x128xf32, #tpu.memory_space<vmem>>, vector<1x2x128xf32>
    %41 = vector.shape_cast %40 : vector<1x2x128xf32> to vector<2x128xf32>
    %c0_16 = arith.constant 0 : index
    %c0_17 = arith.constant 0 : index
    %42 = vector.load %arg3[%c0_16, %c0_17] : memref<32x128xf32, #tpu.memory_space<vmem>>, vector<32x128xf32>
    %cst_18 = arith.constant dense<0.000000e+00> : vector<2x128xf32>
    %43 = tpu.matmul %34, %42, %cst_18 {dimension_numbers = #tpu.dot_dimension_numbers<[1], [0], [0], [1], [0, 0, 1, 1], [], []>} : vector<2x32xf32>, vector<32x128xf32>, vector<2x128xf32> -> vector<2x128xf32>
    %44 = arith.addf %41, %43 : vector<2x128xf32>
    %45 = vector.extract_strided_slice %44 {offsets = [0, 0], sizes = [2, 32], strides = [1, 1]} : vector<2x128xf32> to vector<2x32xf32>
    %46 = arith.negf %45 : vector<2x32xf32>
    %47 = math.exp %46 : vector<2x32xf32>
    %cst_19 = arith.constant 1.000000e+00 : f32
    %48 = vector.broadcast %cst_19 : f32 to vector<2x32xf32>
    %49 = arith.addf %48, %47 : vector<2x32xf32>
    %50 = arith.divf %48, %49 : vector<2x32xf32>
    %51 = vector.extract_strided_slice %44 {offsets = [0, 32], sizes = [2, 32], strides = [1, 1]} : vector<2x128xf32> to vector<2x32xf32>
    %52 = arith.negf %51 : vector<2x32xf32>
    %53 = math.exp %52 : vector<2x32xf32>
    %cst_20 = arith.constant 1.000000e+00 : f32
    %54 = vector.broadcast %cst_20 : f32 to vector<2x32xf32>
    %55 = arith.addf %54, %53 : vector<2x32xf32>
    %56 = arith.divf %54, %55 : vector<2x32xf32>
    %57 = vector.extract_strided_slice %44 {offsets = [0, 64], sizes = [2, 32], strides = [1, 1]} : vector<2x128xf32> to vector<2x32xf32>
    %58 = math.tanh %57 : vector<2x32xf32>
    %59 = vector.extract_strided_slice %44 {offsets = [0, 96], sizes = [2, 32], strides = [1, 1]} : vector<2x128xf32> to vector<2x32xf32>
    %60 = arith.negf %59 : vector<2x32xf32>
    %61 = math.exp %60 : vector<2x32xf32>
    %cst_21 = arith.constant 1.000000e+00 : f32
    %62 = vector.broadcast %cst_21 : f32 to vector<2x32xf32>
    %63 = arith.addf %62, %61 : vector<2x32xf32>
    %64 = arith.divf %62, %63 : vector<2x32xf32>
    %65 = arith.mulf %56, %32 : vector<2x32xf32>
    %66 = arith.mulf %50, %58 : vector<2x32xf32>
    %67 = arith.addf %65, %66 : vector<2x32xf32>
    %68 = math.tanh %67 : vector<2x32xf32>
    %69 = arith.mulf %64, %68 : vector<2x32xf32>
    %c8_i32_22 = arith.constant 8 : i32
    %70 = arith.muli %arg1, %c8_i32_22 : i32
    %c1_i32 = arith.constant 1 : i32
    %71 = arith.addi %70, %c1_i32 : i32
    %c7_i32_23 = arith.constant 7 : i32
    %72 = arith.cmpi eq, %71, %c7_i32_23 : i32
    %73 = arith.extui %72 : i1 to i32
    %c0_i32_24 = arith.constant 0 : i32
    %74 = arith.cmpi ne, %73, %c0_i32_24 : i32
    scf.if %74 {
      %c0_102 = arith.constant 0 : index
      %c0_103 = arith.constant 0 : index
      %295 = vector.load %arg5[%c0_102, %c0_103] : memref<2x32xf32, #tpu.memory_space<vmem>>, vector<2x32xf32>
      tpu.vector_store %arg5[%c0_102, %c0_103], %67 {strides = array<i32>} : memref<2x32xf32, #tpu.memory_space<vmem>>, vector<2x32xf32>,
    } else {
    }
    %c2 = arith.constant 2 : index
    %c0_25 = arith.constant 0 : index
    %c0_26 = arith.constant 0 : index
    %75 = vector.load %arg2[%c2, %c0_25, %c0_26] : memref<8x2x128xf32, #tpu.memory_space<vmem>>, vector<1x2x128xf32>
    %76 = vector.shape_cast %75 : vector<1x2x128xf32> to vector<2x128xf32>
    %c0_27 = arith.constant 0 : index
    %c0_28 = arith.constant 0 : index
    %77 = vector.load %arg3[%c0_27, %c0_28] : memref<32x128xf32, #tpu.memory_space<vmem>>, vector<32x128xf32>
    %cst_29 = arith.constant dense<0.000000e+00> : vector<2x128xf32>
    %78 = tpu.matmul %69, %77, %cst_29 {dimension_numbers = #tpu.dot_dimension_numbers<[1], [0], [0], [1], [0, 0, 1, 1], [], []>} : vector<2x32xf32>, vector<32x128xf32>, vector<2x128xf32> -> vector<2x128xf32>
    %79 = arith.addf %76, %78 : vector<2x128xf32>
    %80 = vector.extract_strided_slice %79 {offsets = [0, 0], sizes = [2, 32], strides = [1, 1]} : vector<2x128xf32> to vector<2x32xf32>
    %81 = arith.negf %80 : vector<2x32xf32>
    %82 = math.exp %81 : vector<2x32xf32>
    %cst_30 = arith.constant 1.000000e+00 : f32
    %83 = vector.broadcast %cst_30 : f32 to vector<2x32xf32>
    %84 = arith.addf %83, %82 : vector<2x32xf32>
    %85 = arith.divf %83, %84 : vector<2x32xf32>
    %86 = vector.extract_strided_slice %79 {offsets = [0, 32], sizes = [2, 32], strides = [1, 1]} : vector<2x128xf32> to vector<2x32xf32>
    %87 = arith.negf %86 : vector<2x32xf32>
    %88 = math.exp %87 : vector<2x32xf32>
    %cst_31 = arith.constant 1.000000e+00 : f32
    %89 = vector.broadcast %cst_31 : f32 to vector<2x32xf32>
    %90 = arith.addf %89, %88 : vector<2x32xf32>
    %91 = arith.divf %89, %90 : vector<2x32xf32>
    %92 = vector.extract_strided_slice %79 {offsets = [0, 64], sizes = [2, 32], strides = [1, 1]} : vector<2x128xf32> to vector<2x32xf32>
    %93 = math.tanh %92 : vector<2x32xf32>
    %94 = vector.extract_strided_slice %79 {offsets = [0, 96], sizes = [2, 32], strides = [1, 1]} : vector<2x128xf32> to vector<2x32xf32>
    %95 = arith.negf %94 : vector<2x32xf32>
    %96 = math.exp %95 : vector<2x32xf32>
    %cst_32 = arith.constant 1.000000e+00 : f32
    %97 = vector.broadcast %cst_32 : f32 to vector<2x32xf32>
    %98 = arith.addf %97, %96 : vector<2x32xf32>
    %99 = arith.divf %97, %98 : vector<2x32xf32>
    %100 = arith.mulf %91, %67 : vector<2x32xf32>
    %101 = arith.mulf %85, %93 : vector<2x32xf32>
    %102 = arith.addf %100, %101 : vector<2x32xf32>
    %103 = math.tanh %102 : vector<2x32xf32>
    %104 = arith.mulf %99, %103 : vector<2x32xf32>
    %c8_i32_33 = arith.constant 8 : i32
    %105 = arith.muli %arg1, %c8_i32_33 : i32
    %c2_i32 = arith.constant 2 : i32
    %106 = arith.addi %105, %c2_i32 : i32
    %c7_i32_34 = arith.constant 7 : i32
    %107 = arith.cmpi eq, %106, %c7_i32_34 : i32
    %108 = arith.extui %107 : i1 to i32
    %c0_i32_35 = arith.constant 0 : i32
    %109 = arith.cmpi ne, %108, %c0_i32_35 : i32
    scf.if %109 {
      %c0_102 = arith.constant 0 : index
      %c0_103 = arith.constant 0 : index
      %295 = vector.load %arg5[%c0_102, %c0_103] : memref<2x32xf32, #tpu.memory_space<vmem>>, vector<2x32xf32>
      tpu.vector_store %arg5[%c0_102, %c0_103], %102 {strides = array<i32>} : memref<2x32xf32, #tpu.memory_space<vmem>>, vector<2x32xf32>,
    } else {
    }
    %c3 = arith.constant 3 : index
    %c0_36 = arith.constant 0 : index
    %c0_37 = arith.constant 0 : index
    %110 = vector.load %arg2[%c3, %c0_36, %c0_37] : memref<8x2x128xf32, #tpu.memory_space<vmem>>, vector<1x2x128xf32>
    %111 = vector.shape_cast %110 : vector<1x2x128xf32> to vector<2x128xf32>
    %c0_38 = arith.constant 0 : index
    %c0_39 = arith.constant 0 : index
    %112 = vector.load %arg3[%c0_38, %c0_39] : memref<32x128xf32, #tpu.memory_space<vmem>>, vector<32x128xf32>
    %cst_40 = arith.constant dense<0.000000e+00> : vector<2x128xf32>
    %113 = tpu.matmul %104, %112, %cst_40 {dimension_numbers = #tpu.dot_dimension_numbers<[1], [0], [0], [1], [0, 0, 1, 1], [], []>} : vector<2x32xf32>, vector<32x128xf32>, vector<2x128xf32> -> vector<2x128xf32>
    %114 = arith.addf %111, %113 : vector<2x128xf32>
    %115 = vector.extract_strided_slice %114 {offsets = [0, 0], sizes = [2, 32], strides = [1, 1]} : vector<2x128xf32> to vector<2x32xf32>
    %116 = arith.negf %115 : vector<2x32xf32>
    %117 = math.exp %116 : vector<2x32xf32>
    %cst_41 = arith.constant 1.000000e+00 : f32
    %118 = vector.broadcast %cst_41 : f32 to vector<2x32xf32>
    %119 = arith.addf %118, %117 : vector<2x32xf32>
    %120 = arith.divf %118, %119 : vector<2x32xf32>
    %121 = vector.extract_strided_slice %114 {offsets = [0, 32], sizes = [2, 32], strides = [1, 1]} : vector<2x128xf32> to vector<2x32xf32>
    %122 = arith.negf %121 : vector<2x32xf32>
    %123 = math.exp %122 : vector<2x32xf32>
    %cst_42 = arith.constant 1.000000e+00 : f32
    %124 = vector.broadcast %cst_42 : f32 to vector<2x32xf32>
    %125 = arith.addf %124, %123 : vector<2x32xf32>
    %126 = arith.divf %124, %125 : vector<2x32xf32>
    %127 = vector.extract_strided_slice %114 {offsets = [0, 64], sizes = [2, 32], strides = [1, 1]} : vector<2x128xf32> to vector<2x32xf32>
    %128 = math.tanh %127 : vector<2x32xf32>
    %129 = vector.extract_strided_slice %114 {offsets = [0, 96], sizes = [2, 32], strides = [1, 1]} : vector<2x128xf32> to vector<2x32xf32>
    %130 = arith.negf %129 : vector<2x32xf32>
    %131 = math.exp %130 : vector<2x32xf32>
    %cst_43 = arith.constant 1.000000e+00 : f32
    %132 = vector.broadcast %cst_43 : f32 to vector<2x32xf32>
    %133 = arith.addf %132, %131 : vector<2x32xf32>
    %134 = arith.divf %132, %133 : vector<2x32xf32>
    %135 = arith.mulf %126, %102 : vector<2x32xf32>
    %136 = arith.mulf %120, %128 : vector<2x32xf32>
    %137 = arith.addf %135, %136 : vector<2x32xf32>
    %138 = math.tanh %137 : vector<2x32xf32>
    %139 = arith.mulf %134, %138 : vector<2x32xf32>
    %c8_i32_44 = arith.constant 8 : i32
    %140 = arith.muli %arg1, %c8_i32_44 : i32
    %c3_i32 = arith.constant 3 : i32
    %141 = arith.addi %140, %c3_i32 : i32
    %c7_i32_45 = arith.constant 7 : i32
    %142 = arith.cmpi eq, %141, %c7_i32_45 : i32
    %143 = arith.extui %142 : i1 to i32
    %c0_i32_46 = arith.constant 0 : i32
    %144 = arith.cmpi ne, %143, %c0_i32_46 : i32
    scf.if %144 {
      %c0_102 = arith.constant 0 : index
      %c0_103 = arith.constant 0 : index
      %295 = vector.load %arg5[%c0_102, %c0_103] : memref<2x32xf32, #tpu.memory_space<vmem>>, vector<2x32xf32>
      tpu.vector_store %arg5[%c0_102, %c0_103], %137 {strides = array<i32>} : memref<2x32xf32, #tpu.memory_space<vmem>>, vector<2x32xf32>,
    } else {
    }
    %145 = tpu.concatenate %34, %69, %104, %139 in 1 : vector<2x32xf32>, vector<2x32xf32>, vector<2x32xf32>, vector<2x32xf32> -> vector<2x128xf32>
    %c0_47 = arith.constant 0 : index
    %c0_48 = arith.constant 0 : index
    %c0_49 = arith.constant 0 : index
    %146 = vector.load %arg4[%c0_47, %c0_48, %c0_49] : memref<2x2x128xf32, #tpu.memory_space<vmem>>, vector<2x1x128xf32>
    %147 = vector.shape_cast %146 : vector<2x1x128xf32> to vector<2x128xf32>
    %148 = vector.shape_cast %145 : vector<2x128xf32> to vector<2x1x128xf32>
    tpu.vector_store %arg4[%c0_47, %c0_48, %c0_49], %148 {strides = array<i32>} : memref<2x2x128xf32, #tpu.memory_space<vmem>>, vector<2x1x128xf32>,
    %c4 = arith.constant 4 : index
    %c0_50 = arith.constant 0 : index
    %c0_51 = arith.constant 0 : index
    %149 = vector.load %arg2[%c4, %c0_50, %c0_51] : memref<8x2x128xf32, #tpu.memory_space<vmem>>, vector<1x2x128xf32>
    %150 = vector.shape_cast %149 : vector<1x2x128xf32> to vector<2x128xf32>
    %c0_52 = arith.constant 0 : index
    %c0_53 = arith.constant 0 : index
    %151 = vector.load %arg3[%c0_52, %c0_53] : memref<32x128xf32, #tpu.memory_space<vmem>>, vector<32x128xf32>
    %cst_54 = arith.constant dense<0.000000e+00> : vector<2x128xf32>
    %152 = tpu.matmul %139, %151, %cst_54 {dimension_numbers = #tpu.dot_dimension_numbers<[1], [0], [0], [1], [0, 0, 1, 1], [], []>} : vector<2x32xf32>, vector<32x128xf32>, vector<2x128xf32> -> vector<2x128xf32>
    %153 = arith.addf %150, %152 : vector<2x128xf32>
    %154 = vector.extract_strided_slice %153 {offsets = [0, 0], sizes = [2, 32], strides = [1, 1]} : vector<2x128xf32> to vector<2x32xf32>
    %155 = arith.negf %154 : vector<2x32xf32>
    %156 = math.exp %155 : vector<2x32xf32>
    %cst_55 = arith.constant 1.000000e+00 : f32
    %157 = vector.broadcast %cst_55 : f32 to vector<2x32xf32>
    %158 = arith.addf %157, %156 : vector<2x32xf32>
    %159 = arith.divf %157, %158 : vector<2x32xf32>
    %160 = vector.extract_strided_slice %153 {offsets = [0, 32], sizes = [2, 32], strides = [1, 1]} : vector<2x128xf32> to vector<2x32xf32>
    %161 = arith.negf %160 : vector<2x32xf32>
    %162 = math.exp %161 : vector<2x32xf32>
    %cst_56 = arith.constant 1.000000e+00 : f32
    %163 = vector.broadcast %cst_56 : f32 to vector<2x32xf32>
    %164 = arith.addf %163, %162 : vector<2x32xf32>
    %165 = arith.divf %163, %164 : vector<2x32xf32>
    %166 = vector.extract_strided_slice %153 {offsets = [0, 64], sizes = [2, 32], strides = [1, 1]} : vector<2x128xf32> to vector<2x32xf32>
    %167 = math.tanh %166 : vector<2x32xf32>
    %168 = vector.extract_strided_slice %153 {offsets = [0, 96], sizes = [2, 32], strides = [1, 1]} : vector<2x128xf32> to vector<2x32xf32>
    %169 = arith.negf %168 : vector<2x32xf32>
    %170 = math.exp %169 : vector<2x32xf32>
    %cst_57 = arith.constant 1.000000e+00 : f32
    %171 = vector.broadcast %cst_57 : f32 to vector<2x32xf32>
    %172 = arith.addf %171, %170 : vector<2x32xf32>
    %173 = arith.divf %171, %172 : vector<2x32xf32>
    %174 = arith.mulf %165, %137 : vector<2x32xf32>
    %175 = arith.mulf %159, %167 : vector<2x32xf32>
    %176 = arith.addf %174, %175 : vector<2x32xf32>
    %177 = math.tanh %176 : vector<2x32xf32>
    %178 = arith.mulf %173, %177 : vector<2x32xf32>
    %c8_i32_58 = arith.constant 8 : i32
    %179 = arith.muli %arg1, %c8_i32_58 : i32
    %c4_i32 = arith.constant 4 : i32
    %180 = arith.addi %179, %c4_i32 : i32
    %c7_i32_59 = arith.constant 7 : i32
    %181 = arith.cmpi eq, %180, %c7_i32_59 : i32
    %182 = arith.extui %181 : i1 to i32
    %c0_i32_60 = arith.constant 0 : i32
    %183 = arith.cmpi ne, %182, %c0_i32_60 : i32
    scf.if %183 {
      %c0_102 = arith.constant 0 : index
      %c0_103 = arith.constant 0 : index
      %295 = vector.load %arg5[%c0_102, %c0_103] : memref<2x32xf32, #tpu.memory_space<vmem>>, vector<2x32xf32>
      tpu.vector_store %arg5[%c0_102, %c0_103], %176 {strides = array<i32>} : memref<2x32xf32, #tpu.memory_space<vmem>>, vector<2x32xf32>,
    } else {
    }
    %c5 = arith.constant 5 : index
    %c0_61 = arith.constant 0 : index
    %c0_62 = arith.constant 0 : index
    %184 = vector.load %arg2[%c5, %c0_61, %c0_62] : memref<8x2x128xf32, #tpu.memory_space<vmem>>, vector<1x2x128xf32>
    %185 = vector.shape_cast %184 : vector<1x2x128xf32> to vector<2x128xf32>
    %c0_63 = arith.constant 0 : index
    %c0_64 = arith.constant 0 : index
    %186 = vector.load %arg3[%c0_63, %c0_64] : memref<32x128xf32, #tpu.memory_space<vmem>>, vector<32x128xf32>
    %cst_65 = arith.constant dense<0.000000e+00> : vector<2x128xf32>
    %187 = tpu.matmul %178, %186, %cst_65 {dimension_numbers = #tpu.dot_dimension_numbers<[1], [0], [0], [1], [0, 0, 1, 1], [], []>} : vector<2x32xf32>, vector<32x128xf32>, vector<2x128xf32> -> vector<2x128xf32>
    %188 = arith.addf %185, %187 : vector<2x128xf32>
    %189 = vector.extract_strided_slice %188 {offsets = [0, 0], sizes = [2, 32], strides = [1, 1]} : vector<2x128xf32> to vector<2x32xf32>
    %190 = arith.negf %189 : vector<2x32xf32>
    %191 = math.exp %190 : vector<2x32xf32>
    %cst_66 = arith.constant 1.000000e+00 : f32
    %192 = vector.broadcast %cst_66 : f32 to vector<2x32xf32>
    %193 = arith.addf %192, %191 : vector<2x32xf32>
    %194 = arith.divf %192, %193 : vector<2x32xf32>
    %195 = vector.extract_strided_slice %188 {offsets = [0, 32], sizes = [2, 32], strides = [1, 1]} : vector<2x128xf32> to vector<2x32xf32>
    %196 = arith.negf %195 : vector<2x32xf32>
    %197 = math.exp %196 : vector<2x32xf32>
    %cst_67 = arith.constant 1.000000e+00 : f32
    %198 = vector.broadcast %cst_67 : f32 to vector<2x32xf32>
    %199 = arith.addf %198, %197 : vector<2x32xf32>
    %200 = arith.divf %198, %199 : vector<2x32xf32>
    %201 = vector.extract_strided_slice %188 {offsets = [0, 64], sizes = [2, 32], strides = [1, 1]} : vector<2x128xf32> to vector<2x32xf32>
    %202 = math.tanh %201 : vector<2x32xf32>
    %203 = vector.extract_strided_slice %188 {offsets = [0, 96], sizes = [2, 32], strides = [1, 1]} : vector<2x128xf32> to vector<2x32xf32>
    %204 = arith.negf %203 : vector<2x32xf32>
    %205 = math.exp %204 : vector<2x32xf32>
    %cst_68 = arith.constant 1.000000e+00 : f32
    %206 = vector.broadcast %cst_68 : f32 to vector<2x32xf32>
    %207 = arith.addf %206, %205 : vector<2x32xf32>
    %208 = arith.divf %206, %207 : vector<2x32xf32>
    %209 = arith.mulf %200, %176 : vector<2x32xf32>
    %210 = arith.mulf %194, %202 : vector<2x32xf32>
    %211 = arith.addf %209, %210 : vector<2x32xf32>
    %212 = math.tanh %211 : vector<2x32xf32>
    %213 = arith.mulf %208, %212 : vector<2x32xf32>
    %c8_i32_69 = arith.constant 8 : i32
    %214 = arith.muli %arg1, %c8_i32_69 : i32
    %c5_i32 = arith.constant 5 : i32
    %215 = arith.addi %214, %c5_i32 : i32
    %c7_i32_70 = arith.constant 7 : i32
    %216 = arith.cmpi eq, %215, %c7_i32_70 : i32
    %217 = arith.extui %216 : i1 to i32
    %c0_i32_71 = arith.constant 0 : i32
    %218 = arith.cmpi ne, %217, %c0_i32_71 : i32
    scf.if %218 {
      %c0_102 = arith.constant 0 : index
      %c0_103 = arith.constant 0 : index
      %295 = vector.load %arg5[%c0_102, %c0_103] : memref<2x32xf32, #tpu.memory_space<vmem>>, vector<2x32xf32>
      tpu.vector_store %arg5[%c0_102, %c0_103], %211 {strides = array<i32>} : memref<2x32xf32, #tpu.memory_space<vmem>>, vector<2x32xf32>,
    } else {
    }
    %c6 = arith.constant 6 : index
    %c0_72 = arith.constant 0 : index
    %c0_73 = arith.constant 0 : index
    %219 = vector.load %arg2[%c6, %c0_72, %c0_73] : memref<8x2x128xf32, #tpu.memory_space<vmem>>, vector<1x2x128xf32>
    %220 = vector.shape_cast %219 : vector<1x2x128xf32> to vector<2x128xf32>
    %c0_74 = arith.constant 0 : index
    %c0_75 = arith.constant 0 : index
    %221 = vector.load %arg3[%c0_74, %c0_75] : memref<32x128xf32, #tpu.memory_space<vmem>>, vector<32x128xf32>
    %cst_76 = arith.constant dense<0.000000e+00> : vector<2x128xf32>
    %222 = tpu.matmul %213, %221, %cst_76 {dimension_numbers = #tpu.dot_dimension_numbers<[1], [0], [0], [1], [0, 0, 1, 1], [], []>} : vector<2x32xf32>, vector<32x128xf32>, vector<2x128xf32> -> vector<2x128xf32>
    %223 = arith.addf %220, %222 : vector<2x128xf32>
    %224 = vector.extract_strided_slice %223 {offsets = [0, 0], sizes = [2, 32], strides = [1, 1]} : vector<2x128xf32> to vector<2x32xf32>
    %225 = arith.negf %224 : vector<2x32xf32>
    %226 = math.exp %225 : vector<2x32xf32>
    %cst_77 = arith.constant 1.000000e+00 : f32
    %227 = vector.broadcast %cst_77 : f32 to vector<2x32xf32>
    %228 = arith.addf %227, %226 : vector<2x32xf32>
    %229 = arith.divf %227, %228 : vector<2x32xf32>
    %230 = vector.extract_strided_slice %223 {offsets = [0, 32], sizes = [2, 32], strides = [1, 1]} : vector<2x128xf32> to vector<2x32xf32>
    %231 = arith.negf %230 : vector<2x32xf32>
    %232 = math.exp %231 : vector<2x32xf32>
    %cst_78 = arith.constant 1.000000e+00 : f32
    %233 = vector.broadcast %cst_78 : f32 to vector<2x32xf32>
    %234 = arith.addf %233, %232 : vector<2x32xf32>
    %235 = arith.divf %233, %234 : vector<2x32xf32>
    %236 = vector.extract_strided_slice %223 {offsets = [0, 64], sizes = [2, 32], strides = [1, 1]} : vector<2x128xf32> to vector<2x32xf32>
    %237 = math.tanh %236 : vector<2x32xf32>
    %238 = vector.extract_strided_slice %223 {offsets = [0, 96], sizes = [2, 32], strides = [1, 1]} : vector<2x128xf32> to vector<2x32xf32>
    %239 = arith.negf %238 : vector<2x32xf32>
    %240 = math.exp %239 : vector<2x32xf32>
    %cst_79 = arith.constant 1.000000e+00 : f32
    %241 = vector.broadcast %cst_79 : f32 to vector<2x32xf32>
    %242 = arith.addf %241, %240 : vector<2x32xf32>
    %243 = arith.divf %241, %242 : vector<2x32xf32>
    %244 = arith.mulf %235, %211 : vector<2x32xf32>
    %245 = arith.mulf %229, %237 : vector<2x32xf32>
    %246 = arith.addf %244, %245 : vector<2x32xf32>
    %247 = math.tanh %246 : vector<2x32xf32>
    %248 = arith.mulf %243, %247 : vector<2x32xf32>
    %c8_i32_80 = arith.constant 8 : i32
    %249 = arith.muli %arg1, %c8_i32_80 : i32
    %c6_i32 = arith.constant 6 : i32
    %250 = arith.addi %249, %c6_i32 : i32
    %c7_i32_81 = arith.constant 7 : i32
    %251 = arith.cmpi eq, %250, %c7_i32_81 : i32
    %252 = arith.extui %251 : i1 to i32
    %c0_i32_82 = arith.constant 0 : i32
    %253 = arith.cmpi ne, %252, %c0_i32_82 : i32
    scf.if %253 {
      %c0_102 = arith.constant 0 : index
      %c0_103 = arith.constant 0 : index
      %295 = vector.load %arg5[%c0_102, %c0_103] : memref<2x32xf32, #tpu.memory_space<vmem>>, vector<2x32xf32>
      tpu.vector_store %arg5[%c0_102, %c0_103], %246 {strides = array<i32>} : memref<2x32xf32, #tpu.memory_space<vmem>>, vector<2x32xf32>,
    } else {
    }
    %c7 = arith.constant 7 : index
    %c0_83 = arith.constant 0 : index
    %c0_84 = arith.constant 0 : index
    %254 = vector.load %arg2[%c7, %c0_83, %c0_84] : memref<8x2x128xf32, #tpu.memory_space<vmem>>, vector<1x2x128xf32>
    %255 = vector.shape_cast %254 : vector<1x2x128xf32> to vector<2x128xf32>
    %c0_85 = arith.constant 0 : index
    %c0_86 = arith.constant 0 : index
    %256 = vector.load %arg3[%c0_85, %c0_86] : memref<32x128xf32, #tpu.memory_space<vmem>>, vector<32x128xf32>
    %cst_87 = arith.constant dense<0.000000e+00> : vector<2x128xf32>
    %257 = tpu.matmul %248, %256, %cst_87 {dimension_numbers = #tpu.dot_dimension_numbers<[1], [0], [0], [1], [0, 0, 1, 1], [], []>} : vector<2x32xf32>, vector<32x128xf32>, vector<2x128xf32> -> vector<2x128xf32>
    %258 = arith.addf %255, %257 : vector<2x128xf32>
    %259 = vector.extract_strided_slice %258 {offsets = [0, 0], sizes = [2, 32], strides = [1, 1]} : vector<2x128xf32> to vector<2x32xf32>
    %260 = arith.negf %259 : vector<2x32xf32>
    %261 = math.exp %260 : vector<2x32xf32>
    %cst_88 = arith.constant 1.000000e+00 : f32
    %262 = vector.broadcast %cst_88 : f32 to vector<2x32xf32>
    %263 = arith.addf %262, %261 : vector<2x32xf32>
    %264 = arith.divf %262, %263 : vector<2x32xf32>
    %265 = vector.extract_strided_slice %258 {offsets = [0, 32], sizes = [2, 32], strides = [1, 1]} : vector<2x128xf32> to vector<2x32xf32>
    %266 = arith.negf %265 : vector<2x32xf32>
    %267 = math.exp %266 : vector<2x32xf32>
    %cst_89 = arith.constant 1.000000e+00 : f32
    %268 = vector.broadcast %cst_89 : f32 to vector<2x32xf32>
    %269 = arith.addf %268, %267 : vector<2x32xf32>
    %270 = arith.divf %268, %269 : vector<2x32xf32>
    %271 = vector.extract_strided_slice %258 {offsets = [0, 64], sizes = [2, 32], strides = [1, 1]} : vector<2x128xf32> to vector<2x32xf32>
    %272 = math.tanh %271 : vector<2x32xf32>
    %273 = vector.extract_strided_slice %258 {offsets = [0, 96], sizes = [2, 32], strides = [1, 1]} : vector<2x128xf32> to vector<2x32xf32>
    %274 = arith.negf %273 : vector<2x32xf32>
    %275 = math.exp %274 : vector<2x32xf32>
    %cst_90 = arith.constant 1.000000e+00 : f32
    %276 = vector.broadcast %cst_90 : f32 to vector<2x32xf32>
    %277 = arith.addf %276, %275 : vector<2x32xf32>
    %278 = arith.divf %276, %277 : vector<2x32xf32>
    %279 = arith.mulf %270, %246 : vector<2x32xf32>
    %280 = arith.mulf %264, %272 : vector<2x32xf32>
    %281 = arith.addf %279, %280 : vector<2x32xf32>
    %282 = math.tanh %281 : vector<2x32xf32>
    %283 = arith.mulf %278, %282 : vector<2x32xf32>
    %c8_i32_91 = arith.constant 8 : i32
    %284 = arith.muli %arg1, %c8_i32_91 : i32
    %c7_i32_92 = arith.constant 7 : i32
    %285 = arith.addi %284, %c7_i32_92 : i32
    %c7_i32_93 = arith.constant 7 : i32
    %286 = arith.cmpi eq, %285, %c7_i32_93 : i32
    %287 = arith.extui %286 : i1 to i32
    %c0_i32_94 = arith.constant 0 : i32
    %288 = arith.cmpi ne, %287, %c0_i32_94 : i32
    scf.if %288 {
      %c0_102 = arith.constant 0 : index
      %c0_103 = arith.constant 0 : index
      %295 = vector.load %arg5[%c0_102, %c0_103] : memref<2x32xf32, #tpu.memory_space<vmem>>, vector<2x32xf32>
      tpu.vector_store %arg5[%c0_102, %c0_103], %281 {strides = array<i32>} : memref<2x32xf32, #tpu.memory_space<vmem>>, vector<2x32xf32>,
    } else {
    }
    %289 = tpu.concatenate %178, %213, %248, %283 in 1 : vector<2x32xf32>, vector<2x32xf32>, vector<2x32xf32>, vector<2x32xf32> -> vector<2x128xf32>
    %c0_95 = arith.constant 0 : index
    %c1_96 = arith.constant 1 : index
    %c0_97 = arith.constant 0 : index
    %290 = vector.load %arg4[%c0_95, %c1_96, %c0_97] : memref<2x2x128xf32, #tpu.memory_space<vmem>>, vector<2x1x128xf32>
    %291 = vector.shape_cast %290 : vector<2x1x128xf32> to vector<2x128xf32>
    %292 = vector.shape_cast %289 : vector<2x128xf32> to vector<2x1x128xf32>
    tpu.vector_store %arg4[%c0_95, %c1_96, %c0_97], %292 {strides = array<i32>} : memref<2x2x128xf32, #tpu.memory_space<vmem>>, vector<2x1x128xf32>,
    %c0_98 = arith.constant 0 : index
    %c0_99 = arith.constant 0 : index
    %293 = vector.load %arg6[%c0_98, %c0_99] : memref<2x32xf32, #tpu.memory_space<vmem>>, vector<2x32xf32>
    tpu.vector_store %arg6[%c0_98, %c0_99], %283 {strides = array<i32>} : memref<2x32xf32, #tpu.memory_space<vmem>>, vector<2x32xf32>,
    %c0_100 = arith.constant 0 : index
    %c0_101 = arith.constant 0 : index
    %294 = vector.load %arg7[%c0_100, %c0_101] : memref<2x32xf32, #tpu.memory_space<vmem>>, vector<2x32xf32>
    tpu.vector_store %arg7[%c0_100, %c0_101], %281 {strides = array<i32>} : memref<2x32xf32, #tpu.memory_space<vmem>>, vector<2x32xf32>,
    return
  }
  func.func @transform_0(%arg0: i32, %arg1: i32) -> (i32, i32, i32) {
    %c0_i32 = arith.constant 0 : i32
    %c0_i32_0 = arith.constant 0 : i32
    return %arg1, %arg0, %c0_i32 : i32, i32, i32
  }
  func.func @transform_1(%arg0: i32, %arg1: i32) -> (i32, i32) {
    %c0_i32 = arith.constant 0 : i32
    %c0_i32_0 = arith.constant 0 : i32
    %c0_i32_1 = arith.constant 0 : i32
    return %c0_i32, %c0_i32_0 : i32, i32
  }
  func.func @transform_2(%arg0: i32, %arg1: i32) -> (i32, i32, i32) {
    %c0_i32 = arith.constant 0 : i32
    %c0_i32_0 = arith.constant 0 : i32
    return %arg0, %arg1, %c0_i32 : i32, i32, i32
  }
  func.func @transform_3(%arg0: i32, %arg1: i32) -> (i32, i32) {
    %c0_i32 = arith.constant 0 : i32
    %c0_i32_0 = arith.constant 0 : i32
    return %arg0, %c0_i32 : i32, i32
  }
}

</mosaic_0001>

<bundles_post_ra>
// kernel: tpu_custom_call.1
= control target key start
LH: loop header
LB: loop body
LE: loop exit
PB: predicated region body
PF: predicated region fallthrough
CT: control target
= control target key end

     0   :  { %9 = vsyncpa [#allocation5], 0  ;;  %s1699_s0 = inlined_call_operand.hbm [shape: f32[8,2,128], index: 0, kind: input, shape index: {}]   ;;  %s1700_s1 = inlined_call_operand.hbm [shape: f32[32,128], index: 1, kind: input, shape index: {}]   ;;  %s1701_s2 = inlined_call_operand.hbm [shape: f32[2,2,128], index: 2, kind: output, shape index: {0}]   ;;  %s1702_s3 = inlined_call_operand.hbm [shape: f32[2,32], index: 3, kind: output, shape index: {1}]  }
   0x1   :  { %10 = vsyncpa [#allocation8], 0 }
   0x2   :  { %11 = vsyncpa [#allocation6], 0 }
   0x3   :  { %12 = vsyncpa [#allocation11], 0  ;;  %s1479_s12 = smov [#allocation4]   ;;  %s1383_s16 = scalar_lea.hbm %s1699_s0, 256 }
   0x4   :  { %s18_s13 = sshll.u32 %s1479_s12, 4  ;;  %p1384_p0 = scmp.ne.s32.totalorder %s1699_s0, %s1383_s16  ;;  %s19_s13 = int_to_ptr.vmem [resolvable:$true] %s18_s13 }
   0x5   :  { %p1387_p1 = scmp.lt.u32.totalorder %s1383_s16, %s1699_s0 }
   0x7   :  { %p1389_p2 = pnand %p1387_p1, %p1384_p0 }
   0x9   :  { %1392 = shalt.err (!%p1389_p2)
}
   0xa   :  { %s1393_s21 = scalar_lea.vmem %s19_s13, 256  ;;  %p1398_p4 = scmp.lt.s32.totalorder %s19_s13, %s19_s13 }
   0xb   :  { %p1394_p3 = scmp.ne.s32.totalorder %s19_s13, %s1393_s21  ;;  %p1399_p5 = scmp.lt.s32.totalorder %s1393_s21, %s1393_s21 }
   0xd   :  { %p1400_p6 = por %p1399_p5, %p1398_p4 }
   0xf   :  { %p1401_p7 = pnand %p1400_p6, %p1394_p3 }
  0x11   :  { %1404 = shalt.err (!%p1401_p7)
}
  0x12   :  { %s1480_s22 = smov 32   ;;  %s1481_s23 = smov 2  }
  0x13   :  { %24 = dma.hbm_to_vmem [thread:$0]  %s1699_s0, 256, %s19_s13, [#allocation5], %s1480_s22, %s1480_s22, %s1481_s23  }
  0x14   :  { %s1482_s26 = smov [#allocation7]   ;;  %s1405_s30 = scalar_lea.hbm %s1700_s1, 512 }
  0x15   :  { %s30_s27 = sshll.u32 %s1482_s26, 4  ;;  %p1406_p8 = scmp.ne.s32.totalorder %s1700_s1, %s1405_s30  ;;  %s31_s27 = int_to_ptr.vmem [resolvable:$true] %s30_s27 }
  0x16   :  { %p1409_p9 = scmp.lt.u32.totalorder %s1405_s30, %s1700_s1 }
  0x18   :  { %p1411_p10 = pnand %p1409_p9, %p1406_p8 }
  0x1a   :  { %1414 = shalt.err (!%p1411_p10)
}
  0x1b   :  { %s1415_s8 = scalar_lea.vmem %s31_s27, 512  ;;  %p1420_p12 = scmp.lt.s32.totalorder %s31_s27, %s31_s27 }
  0x1c   :  { %p1416_p11 = scmp.ne.s32.totalorder %s31_s27, %s1415_s8  ;;  %p1421_p13 = scmp.lt.s32.totalorder %s1415_s8, %s1415_s8 }
  0x1e   :  { %p1422_p0 = por %p1421_p13, %p1420_p12 }
  0x20   :  { %p1423_p1 = pnand %p1422_p0, %p1416_p11 }
  0x22   :  { %1426 = shalt.err (!%p1423_p1)
}
  0x23   :  { %s1483_s0 = smov 128   ;;  %s1484_s9 = smov 8  }
  0x24   :  { %36 = dma.hbm_to_vmem [thread:$0]  %s1700_s1, 512, %s31_s27, [#allocation8], %s1483_s0, %s1483_s0, %s1484_s9  }
  0x25   :  { %1471 = dma.done.wait [#allocation5], 256  }
  0x26   :  { %1472 = vsyncadd [#allocation5], 4294967040 }
  0x27   :  { %1473 = dma.done.wait [#allocation8], 512  }
  0x28   :  { %1474 = vsyncadd [#allocation8], 4294966784  ;;  %vm47_vm0 = vcmask 254976   ;;  %v1485_v0 = vmov 0.0|0.0   ;;  %vm1486_vm1 = vmmov 0   ;;  %v1487_v1 = vmov 0.0  }
  0x29   :  { %1257 = vmatprep.subr.bf16.mxu0 %v1485_v0  ;;  %1177 = vmatprep.mubr.msk.f32.mxu0 %vm1486_vm1, %v1487_v1  ;;  %48 = vst.msk [vmem:[#allocation2] sm:$0x3] %vm47_vm0, %v1487_v1  ;;  %49 = vst.msk [vmem:[#allocation3] sm:$0x3] %vm47_vm0, %v1487_v1  ;;  %v53_v2 = vld [vmem:[#allocation7] sm:$0xff]  ;;  %v54_v3 = vld [vmem:[#allocation7 + $0x8] sm:$0xff] }
  0x2a   :  { %1263 = vmatprep.subr.bf16.mxu1 %v1485_v0  ;;  %1188 = vmatprep.mubr.msk.f32.mxu1 %vm1486_vm1, %v1487_v1  ;;  %v55_v4 = vld [vmem:[#allocation7 + $0x10] sm:$0xff]  ;;  %v1550_v5 = vpack.c.bf16 %v54_v3, %v53_v2  ;;  %v56_v6 = vld [vmem:[#allocation7 + $0x18] sm:$0xff]  ;;  %vm57_vm2 = vcmask 261120   ;;  %s1488_s1 = smov 64   ;;  %s1489_s12 = smov 96   ;;  %vm530_vm3 = vcmask 523264  }
  0x2b   :  { %v1553_v7 = vpack.c.bf16 %v56_v6, %v55_v4  ;;  %v52_v9 = vld [vmem:[#allocation4] sm:$0x3]  ;;  %v172_v29 = vld [vmem:[#allocation4 + $0x2] sm:$0x3]  ;;  %v289_v47 = vld [vmem:[#allocation4 + $0x4] sm:$0x3] }
  0x2c   :  { %1259 = vmatpush3.bf16.msra.mxu0 %v1550_v5  ;;  %1265 = vmatpush3.bf16.msra.mxu1 %v1550_v5  ;;  %v406_v3 = vld [vmem:[#allocation4 + $0x6] sm:$0x3]  ;;  %vm532_vm4 = vcmask 785408   ;;  %s1491_s13 = smov [#allocation10]  }
  0x2d   :  { %1260 = vmatprep.subr.bf16.mxu0 %v1485_v0  ;;  %1266 = vmatprep.subr.bf16.mxu1 %v1485_v0  ;;  %s1095_s14 = sshll.u32 %s1491_s13, 4  ;;  %s1096_s14 = int_to_ptr.vmem [resolvable:$true] %s1095_s14 }
  0x2e   :  { %s1427_s15 = scalar_lea.vmem %s1096_s14, 32  ;;  %p1432_p3 = scmp.lt.s32.totalorder %s1096_s14, %s1096_s14 }
  0x2f   :  { %p1428_p2 = scmp.ne.s32.totalorder %s1096_s14, %s1427_s15  ;;  %p1433_p4 = scmp.lt.s32.totalorder %s1427_s15, %s1427_s15 }
  0x30   :  { %1262 = vmatpush3.bf16.msra.mxu0 %v1553_v7  ;;  %v50_v8 = vld [vmem:[#allocation2] sm:$0x3]  ;;  %1268 = vmatpush3.bf16.msra.mxu1 %v1553_v7  ;;  %v51_v14 = vld [vmem:[#allocation3] sm:$0x3] }
  0x31   :  { %1269 = vmatprep.subr.bf16.mxu0 %v1485_v0  ;;  %1275 = vmatprep.subr.bf16.mxu1 %v1485_v0  ;;  %p1434_p5 = por %p1433_p4, %p1432_p3 }
  0x33   :  { %1178 = vmatmul.mubr.msk.f32.vlgmr.msra.gmra.mrb[0].mxu0 %vm57_vm2, %v50_v8  ;;  %p1435_p6 = pnand %p1434_p5, %p1428_p2 }
  0x34   :  { %1271 = vmatpush3.bf16.msra.mxu0 %v1550_v5  ;;  %1199 = vmatprep.mubr.msk.f32.mxu0 %vm1486_vm1, %v1487_v1 }
  0x35   :  { %1272 = vmatprep.subr.bf16.mxu0 %v1485_v0 }
  0x38   :  { %1274 = vmatpush3.bf16.msra.mxu0 %v1553_v7 }
  0x39   :  { %1281 = vmatprep.subr.bf16.mxu0 %v1485_v0 }
 0x106   :  { %v127_v10 = vpop.f32.mrb[0].mxu0 }
 0x107   :  { %v131_v11 = vadd.f32 %v127_v10, %v52_v9  ;;  %v1179_v12 = vpop.f32.mrb[1].mxu0 }
 0x109   :  { %1319 = vtanh.f32 %v131_v11  ;;  %v1110_v15 = vmul.f32 -1.442695, %v131_v11 }
 0x10b   :  { %1321 = vpow2.f32 %v1110_v15 }
 0x113   :  { %v1320_v13 = vpop.eup %1319 }
 0x114   :  { %145 = vrot.lane.b32.xlu0 %v1320_v13, %s1488_s1 }
 0x115   :  { %v1322_v16 = vpop.eup %1321 }
 0x116   :  { %v135_v17 = vadd.f32 1.0, %v1322_v16 }
 0x118   :  { %140 = vrot.lane.b32.xlu0 %v51_v14, %s1480_s22  ;;  %1323 = vrcp.f32 %v135_v17 }
 0x122   :  { %v1324_v18 = vpop.eup %1323 }
 0x186   :  { %v146_v19 = vpop.permute.xlu0 %145 }
 0x187   :  { %v148_v20 = vmul.f32 %v1324_v18, %v146_v19 }
 0x189   :  { %150 = vrot.lane.b32.xlu1 %v148_v20, %s1480_s22 }
 0x18a   :  { %v141_v21 = vpop.permute.xlu0 %140 }
 0x18b   :  { %v143_v22 = vmul.f32 %v1324_v18, %v141_v21 }
 0x1fb   :  { %v151_v23 = vpop.permute.xlu1 %150 }
 0x1fc   :  { %v153_v24 = vadd.f32 %v151_v23, %v143_v22  ;;  %v562_v23 = vld [vmem:[#allocation4 + $0x8] sm:$0x3] }
 0x1fe   :  { %1325 = vtanh.f32 %v153_v24 }
 0x208   :  { %v1326_v25 = vpop.eup %1325 }
 0x209   :  { %156 = vrot.lane.b32.xlu1 %v1326_v25, %s1488_s1 }
 0x27b   :  { %v157_v26 = vpop.permute.xlu1 %156 }
 0x27c   :  { %v159_v27 = vmul.f32 %v1324_v18, %v157_v26 }
 0x27e   :  { %178 = vrot.lane.b32.xlu0 %v159_v27, %s1480_s22 }
 0x2f0   :  { %v1574_v28 = vpop.permute.xlu0 %178 }
 0x2f1   :  { %1189 = vmatmul.mubr.msk.f32.vlgmr.msra.gmra.mrb[0].mxu1 %vm57_vm2, %v1574_v28 }
 0x2f2   :  { %1277 = vmatpush3.bf16.msra.mxu1 %v1550_v5  ;;  %1210 = vmatprep.mubr.msk.f32.mxu1 %vm1486_vm1, %v1487_v1 }
 0x2f3   :  { %1278 = vmatprep.subr.bf16.mxu1 %v1485_v0 }
 0x2f6   :  { %1280 = vmatpush3.bf16.msra.mxu1 %v1553_v7 }
 0x2f7   :  { %1287 = vmatprep.subr.bf16.mxu1 %v1485_v0 }
 0x3c4   :  { %v248_v30 = vpop.f32.mrb[0].mxu1 }
 0x3c5   :  { %v252_v31 = vadd.f32 %v248_v30, %v172_v29  ;;  %v1190_v32 = vpop.f32.mrb[1].mxu1 }
 0x3c7   :  { %1327 = vtanh.f32 %v252_v31  ;;  %v1112_v34 = vmul.f32 -1.442695, %v252_v31 }
 0x3c9   :  { %1329 = vpow2.f32 %v1112_v34 }
 0x3d1   :  { %v1328_v33 = vpop.eup %1327 }
 0x3d2   :  { %262 = vrot.lane.b32.xlu1 %v1328_v33, %s1488_s1 }
 0x3d3   :  { %v1330_v35 = vpop.eup %1329 }
 0x3d4   :  { %v256_v36 = vadd.f32 1.0, %v1330_v35 }
 0x3d6   :  { %1331 = vrcp.f32 %v256_v36 }
 0x3e0   :  { %v1332_v37 = vpop.eup %1331 }
 0x3e1   :  { %v260_v40 = vmul.f32 %v1332_v37, %v153_v24 }
 0x444   :  { %v263_v38 = vpop.permute.xlu1 %262 }
 0x445   :  { %v265_v39 = vmul.f32 %v1332_v37, %v263_v38 }
 0x447   :  { %267 = vrot.lane.b32.xlu0 %v265_v39, %s1480_s22 }
 0x4b9   :  { %v268_v41 = vpop.permute.xlu0 %267 }
 0x4ba   :  { %v270_v42 = vadd.f32 %v268_v41, %v260_v40 }
 0x4bc   :  { %1333 = vtanh.f32 %v270_v42 }
 0x4c6   :  { %v1334_v43 = vpop.eup %1333 }
 0x4c7   :  { %273 = vrot.lane.b32.xlu1 %v1334_v43, %s1488_s1 }
 0x539   :  { %v274_v44 = vpop.permute.xlu1 %273 }
 0x53a   :  { %v1587_v45 = vmul.f32 %v1332_v37, %v274_v44 }
 0x53c   :  { %295 = vrot.lane.b32.xlu0 %v1587_v45, %s1480_s22 }
 0x5ae   :  { %v296_v46 = vpop.permute.xlu0 %295 }
 0x5af   :  { %1200 = vmatmul.mubr.msk.f32.vlgmr.msra.gmra.mrb[2].mxu0 %vm57_vm2, %v296_v46 }
 0x5b0   :  { %1283 = vmatpush3.bf16.msra.mxu0 %v1550_v5  ;;  %1221 = vmatprep.mubr.msk.f32.mxu0 %vm1486_vm1, %v1487_v1 }
 0x5b1   :  { %1284 = vmatprep.subr.bf16.mxu0 %v1485_v0 }
 0x5b4   :  { %1286 = vmatpush3.bf16.msra.mxu0 %v1553_v7 }
 0x5b5   :  { %1293 = vmatprep.subr.bf16.mxu0 %v1485_v0 }
 0x682   :  { %v365_v48 = vpop.f32.mrb[2].mxu0 }
 0x683   :  { %v369_v49 = vadd.f32 %v365_v48, %v289_v47  ;;  %v1201_v50 = vpop.f32.mrb[3].mxu0 }
 0x685   :  { %1335 = vtanh.f32 %v369_v49  ;;  %v1114_v52 = vmul.f32 -1.442695, %v369_v49 }
 0x687   :  { %1337 = vpow2.f32 %v1114_v52 }
 0x68f   :  { %v1336_v51 = vpop.eup %1335 }
 0x690   :  { %379 = vrot.lane.b32.xlu1 %v1336_v51, %s1488_s1 }
 0x691   :  { %v1338_v53 = vpop.eup %1337 }
 0x692   :  { %v373_v54 = vadd.f32 1.0, %v1338_v53 }
 0x694   :  { %1339 = vrcp.f32 %v373_v54 }
 0x69e   :  { %v1340_v55 = vpop.eup %1339 }
 0x69f   :  { %v377_v58 = vmul.f32 %v1340_v55, %v270_v42  ;;  %v679_v42 = vld [vmem:[#allocation4 + $0xa] sm:$0x3] }
 0x702   :  { %v380_v56 = vpop.permute.xlu1 %379 }
 0x703   :  { %v382_v57 = vmul.f32 %v1340_v55, %v380_v56 }
 0x705   :  { %384 = vrot.lane.b32.xlu0 %v382_v57, %s1480_s22  ;;  %v796_v57 = vld [vmem:[#allocation4 + $0xc] sm:$0x3] }
 0x777   :  { %v385_v59 = vpop.permute.xlu0 %384 }
 0x778   :  { %v387_v60 = vadd.f32 %v385_v59, %v377_v58 }
 0x77a   :  { %1341 = vtanh.f32 %v387_v60 }
 0x784   :  { %v1342_v61 = vpop.eup %1341 }
 0x785   :  { %390 = vrot.lane.b32.xlu1 %v1342_v61, %s1488_s1 }
 0x7f7   :  { %v391_v62 = vpop.permute.xlu1 %390 }
 0x7f8   :  { %v1601_v63 = vmul.f32 %v1340_v55, %v391_v62 }
 0x7fa   :  { %412 = vrot.lane.b32.xlu0 %v1601_v63, %s1480_s22 }
 0x86c   :  { %v413_v2 = vpop.permute.xlu0 %412 }
 0x86d   :  { %1211 = vmatmul.mubr.msk.f32.vlgmr.msra.gmra.mrb[2].mxu1 %vm57_vm2, %v413_v2 }
 0x86e   :  { %1289 = vmatpush3.bf16.msra.mxu1 %v1550_v5  ;;  %1232 = vmatprep.mubr.msk.f32.mxu1 %vm1486_vm1, %v1487_v1 }
 0x86f   :  { %1290 = vmatprep.subr.bf16.mxu1 %v1485_v0 }
 0x872   :  { %1292 = vmatpush3.bf16.msra.mxu1 %v1553_v7 }
 0x873   :  { %1299 = vmatprep.subr.bf16.mxu1 %v1485_v0 }
 0x940   :  { %v482_v4 = vpop.f32.mrb[2].mxu1 }
 0x941   :  { %v486_v6 = vadd.f32 %v482_v4, %v406_v3  ;;  %v1212_v8 = vpop.f32.mrb[3].mxu1 }
 0x943   :  { %1343 = vtanh.f32 %v486_v6  ;;  %v1116_v10 = vmul.f32 -1.442695, %v486_v6 }
 0x945   :  { %1345 = vpow2.f32 %v1116_v10 }
 0x94d   :  { %v1344_v9 = vpop.eup %1343 }
 0x94e   :  { %496 = vrot.lane.b32.xlu1 %v1344_v9, %s1488_s1 }
 0x94f   :  { %v1346_v11 = vpop.eup %1345 }
 0x950   :  { %v490_v12 = vadd.f32 1.0, %v1346_v11 }
 0x952   :  { %1347 = vrcp.f32 %v490_v12 }
 0x95c   :  { %v1348_v13 = vpop.eup %1347 }
 0x95d   :  { %v494_v16 = vmul.f32 %v1348_v13, %v387_v60 }
 0x9c0   :  { %v497_v14 = vpop.permute.xlu1 %496 }
 0x9c1   :  { %v499_v15 = vmul.f32 %v1348_v13, %v497_v14 }
 0x9c3   :  { %501 = vrot.lane.b32.xlu0 %v499_v15, %s1480_s22 }
 0xa35   :  { %v502_v17 = vpop.permute.xlu0 %501 }
 0xa36   :  { %v504_v18 = vadd.f32 %v502_v17, %v494_v16  ;;  %v913_v16 = vld [vmem:[#allocation4 + $0xe] sm:$0x3] }
 0xa38   :  { %1349 = vtanh.f32 %v504_v18 }
 0xa42   :  { %v1350_v19 = vpop.eup %1349 }
 0xa43   :  { %507 = vrot.lane.b32.xlu1 %v1350_v19, %s1488_s1 }
 0xab5   :  { %v508_v20 = vpop.permute.xlu1 %507 }
 0xab6   :  { %v1615_v21 = vmul.f32 %v1348_v13, %v508_v20 }
 0xab8   :  { %568 = vrot.lane.b32.xlu0 %v1615_v21, %s1480_s22 }
 0xb2a   :  { %v569_v22 = vpop.permute.xlu0 %568 }
 0xb2b   :  { %1222 = vmatmul.mubr.msk.f32.vlgmr.msra.gmra.mrb[4].mxu0 %vm57_vm2, %v569_v22 }
 0xb2c   :  { %1295 = vmatpush3.bf16.msra.mxu0 %v1550_v5  ;;  %1243 = vmatprep.mubr.msk.f32.mxu0 %vm1486_vm1, %v1487_v1 }
 0xb2d   :  { %1296 = vmatprep.subr.bf16.mxu0 %v1485_v0 }
 0xb30   :  { %1298 = vmatpush3.bf16.msra.mxu0 %v1553_v7 }
 0xbfe   :  { %v638_v24 = vpop.f32.mrb[4].mxu0 }
 0xbff   :  { %v642_v25 = vadd.f32 %v638_v24, %v562_v23  ;;  %v1223_v26 = vpop.f32.mrb[5].mxu0 }
 0xc01   :  { %1351 = vtanh.f32 %v642_v25  ;;  %v1120_v29 = vmul.f32 -1.442695, %v642_v25 }
 0xc03   :  { %1353 = vpow2.f32 %v1120_v29 }
 0xc0b   :  { %v1352_v27 = vpop.eup %1351 }
 0xc0c   :  { %652 = vrot.lane.b32.xlu1 %v1352_v27, %s1488_s1 }
 0xc0d   :  { %v1354_v30 = vpop.eup %1353 }
 0xc0e   :  { %v646_v31 = vadd.f32 1.0, %v1354_v30  ;;  %v1490_v30 = vmov 1966171168  }
 0xc10   :  { %1355 = vrcp.f32 %v646_v31  ;;  %v536_v31 = vunpack.c.l.s4 %v1490_v30 }
 0xc1a   :  { %v1356_v32 = vpop.eup %1355 }
 0xc1b   :  { %v650_v35 = vmul.f32 %v1356_v32, %v504_v18 }
 0xc7e   :  { %v653_v33 = vpop.permute.xlu1 %652 }
 0xc7f   :  { %v655_v34 = vmul.f32 %v1356_v32, %v653_v33 }
 0xc81   :  { %657 = vrot.lane.b32.xlu0 %v655_v34, %s1480_s22 }
 0xcf3   :  { %v658_v36 = vpop.permute.xlu0 %657 }
 0xcf4   :  { %v660_v37 = vadd.f32 %v658_v36, %v650_v35  ;;  %v537_v35 = vunpack.c.0.s8 %v536_v31 }
 0xcf6   :  { %1357 = vtanh.f32 %v660_v37 }
 0xd00   :  { %v1358_v38 = vpop.eup %1357 }
 0xd01   :  { %663 = vrot.lane.b32.xlu1 %v1358_v38, %s1488_s1 }
 0xd73   :  { %v664_v39 = vpop.permute.xlu1 %663 }
 0xd74   :  { %v666_v40 = vmul.f32 %v1356_v32, %v664_v39  ;;  %v538_v32 = vlaneseq }
 0xd76   :  { %685 = vrot.lane.b32.xlu0 %v666_v40, %s1480_s22  ;;  %v539_v36 = vshrl.u32 %v538_v32, 7 }
 0xd78   :  { %v540_v38 = vsub.s32 %v537_v35, %v539_v36 }
 0xde8   :  { %v1629_v41 = vpop.permute.xlu0 %685 }
 0xde9   :  { %1233 = vmatmul.mubr.msk.f32.vlgmr.msra.gmra.mrb[4].mxu1 %vm57_vm2, %v1629_v41 }
 0xdea   :  { %1301 = vmatpush3.bf16.msra.mxu1 %v1550_v5  ;;  %1254 = vmatprep.mubr.msk.f32.mxu1 %vm1486_vm1, %v1487_v1 }
 0xdeb   :  { %1302 = vmatprep.subr.bf16.mxu1 %v1485_v0 }
 0xdee   :  { %1304 = vmatpush3.bf16.msra.mxu1 %v1553_v7 }
 0xebc   :  { %v755_v43 = vpop.f32.mrb[4].mxu1 }
 0xebd   :  { %v759_v44 = vadd.f32 %v755_v43, %v679_v42  ;;  %v1234_v46 = vpop.f32.mrb[5].mxu1 }
 0xebf   :  { %1359 = vtanh.f32 %v759_v44  ;;  %v1122_v48 = vmul.f32 -1.442695, %v759_v44 }
 0xec1   :  { %1361 = vpow2.f32 %v1122_v48 }
 0xec9   :  { %v1360_v47 = vpop.eup %1359 }
 0xeca   :  { %769 = vrot.lane.b32.xlu1 %v1360_v47, %s1488_s1 }
 0xecb   :  { %v1362_v49 = vpop.eup %1361 }
 0xecc   :  { %v763_v50 = vadd.f32 1.0, %v1362_v49 }
 0xece   :  { %1363 = vrcp.f32 %v763_v50 }
 0xed8   :  { %v1364_v5 = vpop.eup %1363 }
 0xed9   :  { %v767_v0 = vmul.f32 %v1364_v5, %v660_v37 }
 0xf3c   :  { %v770_v51 = vpop.permute.xlu1 %769 }
 0xf3d   :  { %v772_v1 = vmul.f32 %v1364_v5, %v770_v51 }
 0xf3f   :  { %774 = vrot.lane.b32.xlu0 %v772_v1, %s1480_s22 }
 0xfb1   :  { %v775_v7 = vpop.permute.xlu0 %774 }
 0xfb2   :  { %v777_v52 = vadd.f32 %v775_v7, %v767_v0 }
 0xfb4   :  { %1365 = vtanh.f32 %v777_v52 }
 0xfbe   :  { %v1366_v53 = vpop.eup %1365 }
 0xfbf   :  { %780 = vrot.lane.b32.xlu1 %v1366_v53, %s1488_s1 }
0x1031   :  { %v781_v54 = vpop.permute.xlu1 %780 }
0x1032   :  { %v1641_v55 = vmul.f32 %v1364_v5, %v781_v54 }
0x1034   :  { %802 = vrot.lane.b32.xlu0 %v1641_v55, %s1480_s22 }
0x10a6   :  { %v803_v56 = vpop.permute.xlu0 %802 }
0x10a7   :  { %1244 = vmatmul.mubr.msk.f32.vlgmr.msra.gmra.mrb[6].mxu0 %vm57_vm2, %v803_v56 }
0x117a   :  { %v872_v58 = vpop.f32.mrb[6].mxu0 }
0x117b   :  { %v876_v59 = vadd.f32 %v872_v58, %v796_v57  ;;  %v1245_v60 = vpop.f32.mrb[7].mxu0 }
0x117d   :  { %1367 = vtanh.f32 %v876_v59  ;;  %v1124_v62 = vmul.f32 -1.442695, %v876_v59 }
0x117f   :  { %1369 = vpow2.f32 %v1124_v62 }
0x1187   :  { %v1368_v61 = vpop.eup %1367 }
0x1188   :  { %886 = vrot.lane.b32.xlu1 %v1368_v61, %s1488_s1 }
0x1189   :  { %v1370_v2 = vpop.eup %1369 }
0x118a   :  { %v880_v3 = vadd.f32 1.0, %v1370_v2 }
0x118c   :  { %1371 = vrcp.f32 %v880_v3 }
0x1196   :  { %v1372_v4 = vpop.eup %1371 }
0x1197   :  { %v884_v9 = vmul.f32 %v1372_v4, %v777_v52 }
0x11fa   :  { %v887_v6 = vpop.permute.xlu1 %886 }
0x11fb   :  { %v889_v8 = vmul.f32 %v1372_v4, %v887_v6 }
0x11fd   :  { %891 = vrot.lane.b32.xlu0 %v889_v8, %s1480_s22 }
0x126f   :  { %v892_v10 = vpop.permute.xlu0 %891 }
0x1270   :  { %v894_v11 = vadd.f32 %v892_v10, %v884_v9 }
0x1272   :  { %1373 = vtanh.f32 %v894_v11 }
0x127c   :  { %v1374_v12 = vpop.eup %1373 }
0x127d   :  { %897 = vrot.lane.b32.xlu1 %v1374_v12, %s1488_s1 }
0x12ef   :  { %v898_v13 = vpop.permute.xlu1 %897 }
0x12f0   :  { %v900_v14 = vmul.f32 %v1372_v4, %v898_v13 }
0x12f2   :  { %919 = vrot.lane.b32.xlu0 %v900_v14, %s1480_s22 }
0x1364   :  { %v920_v15 = vpop.permute.xlu0 %919 }
0x1365   :  { %1255 = vmatmul.mubr.msk.f32.vlgmr.msra.gmra.mrb[6].mxu1 %vm57_vm2, %v920_v15 }
0x1438   :  { %v989_v17 = vpop.f32.mrb[6].mxu1 }
0x1439   :  { %v993_v18 = vadd.f32 %v989_v17, %v913_v16  ;;  %v1256_v19 = vpop.f32.mrb[7].mxu1 }
0x143b   :  { %1375 = vtanh.f32 %v993_v18  ;;  %v1126_v22 = vmul.f32 -1.442695, %v993_v18 }
0x143d   :  { %1377 = vpow2.f32 %v1126_v22 }
0x1445   :  { %v1376_v20 = vpop.eup %1375 }
0x1446   :  { %1003 = vrot.lane.b32.xlu1 %v1376_v20, %s1488_s1 }
0x1447   :  { %v1378_v23 = vpop.eup %1377 }
0x1448   :  { %v997_v24 = vadd.f32 1.0, %v1378_v23 }
0x144a   :  { %1379 = vrcp.f32 %v997_v24 }
0x1454   :  { %v1380_v25 = vpop.eup %1379 }
0x1455   :  { %v1001_v29 = vmul.f32 %v1380_v25, %v894_v11 }
0x14b8   :  { %v1004_v26 = vpop.permute.xlu1 %1003 }
0x14b9   :  { %v1006_v27 = vmul.f32 %v1380_v25, %v1004_v26 }
0x14bb   :  { %1008 = vrot.lane.b32.xlu0 %v1006_v27, %s1480_s22 }
0x14bf   :  { %523 = vrot.lane.b32.xlu0 %v1587_v45, %s1488_s1 }
0x14c3   :  { %526 = vrot.lane.b32.xlu0 %v1601_v63, %s1489_s12 }
0x152d   :  { %v1009_v33 = vpop.permute.xlu0 %1008 }
0x152e   :  { %v1011_v34 = vadd.f32 %v1009_v33, %v1001_v29 }
0x1530   :  { %1381 = vtanh.f32 %v1011_v34  ;;  %1024 = vrot.lane.b32.xlu0 %v1011_v34, %s1489_s12 }
0x1531   :  { %v524_v37 = vpop.permute.xlu0 %523 }
0x1532   :  { %v529_v45 = vsel %vm57_vm2, %v1574_v28, %v524_v37 }
0x1534   :  { %1073 = vrot.lane.b32.xlu0 %v1011_v34, %s1489_s12 }
0x1535   :  { %v527_v39 = vpop.permute.xlu0 %526 }
0x1536   :  { %v531_v63 = vsel %vm530_vm3, %v529_v45, %v527_v39 }
0x1537   :  { %v533_v40 = vsel %vm532_vm4, %v531_v63, %v1615_v21 }
0x1538   :  { %v541_v42 = vrot.slane %v533_v40, %v540_v38 }
0x153a   :  { %v1382_v43 = vpop.eup %1381  ;;  %v542_v44 = vcombine.high %v541_v42, %v541_v42  ;;  %1117 = vst.sshfl [vmem:[#allocation9] sm:$0x1 pattern:$0x73625140] %v541_v42 }
0x153b   :  { %1014 = vrot.lane.b32.xlu1 %v1382_v43, %s1488_s1 }
0x153c   :  { %1118 = vst.sshfl [vmem:[#allocation9 + $0x2] sm:$0x1 pattern:$0x73625140] %v542_v44 }
0x153f   :  { %1030 = vrot.lane.b32.xlu1 %v1641_v55, %s1488_s1 }
0x1543   :  { %1033 = vrot.lane.b32.xlu1 %v900_v14, %s1489_s12 }
0x15a2   :  { %v1025_v28 = vpop.permute.xlu0 %1024 }
0x15a3   :  { %1028 = vst.msk [vmem:[#allocation10] sm:$0x3] %vm47_vm0, %v1025_v28 }
0x15a4   :  { %1438 = shalt.err (!%p1435_p6)
}
0x15a5   :  { %s1439_s18 = scalar_lea.hbm %s1702_s3, 32 }
0x15a6   :  { %p1440_p7 = scmp.ne.s32.totalorder %s1702_s3, %s1439_s18  ;;  %p1443_p8 = scmp.lt.u32.totalorder %s1439_s18, %s1702_s3 }
0x15a8   :  { %p1445_p9 = pnand %p1443_p8, %p1440_p7 }
0x15aa   :  { %1448 = shalt.err (!%p1445_p9)
}
0x15ab   :  { %1098 = dma.vmem_to_hbm [thread:$0]  %s1096_s14, 32, %s1702_s3, [#allocation11]   ;;  %v1074_v21 = vpop.permute.xlu0 %1073 }
0x15ac   :  { %1076 = vst.msk [vmem:[#allocation3] sm:$0x3] %vm47_vm0, %v1074_v21  ;;  %s1492_s27 = smov [#allocation9]  }
0x15ad   :  { %v1015_v46 = vpop.permute.xlu1 %1014  ;;  %s1082_s28 = sshll.u32 %s1492_s27, 4  ;;  %s1083_s28 = int_to_ptr.vmem [resolvable:$true] %s1082_s28 }
0x15ae   :  { %v1017_v47 = vmul.f32 %v1380_v25, %v1015_v46  ;;  %s1449_s3 = scalar_lea.vmem %s1083_s28, 64  ;;  %p1454_p11 = scmp.lt.s32.totalorder %s1083_s28, %s1083_s28 }
0x15af   :  { %p1450_p10 = scmp.ne.s32.totalorder %s1083_s28, %s1449_s3  ;;  %p1455_p12 = scmp.lt.s32.totalorder %s1449_s3, %s1449_s3 }
0x15b0   :  { %1067 = vrot.lane.b32.xlu1 %v1017_v47, %s1480_s22 }
0x15b1   :  { %v1031_v48 = vpop.permute.xlu1 %1030  ;;  %p1456_p13 = por %p1455_p12, %p1454_p11 }
0x15b2   :  { %v1036_v49 = vsel %vm57_vm2, %v1629_v41, %v1031_v48 }
0x15b3   :  { %p1457_p0 = pnand %p1456_p13, %p1450_p10 }
0x15b5   :  { %v1034_v50 = vpop.permute.xlu1 %1033 }
0x15b6   :  { %v1037_v5 = vsel %vm530_vm3, %v1036_v49, %v1034_v50 }
0x15b7   :  { %v1038_v51 = vsel %vm532_vm4, %v1037_v5, %v1017_v47 }
0x15b8   :  { %v1046_v1 = vrot.slane %v1038_v51, %v540_v38 }
0x15ba   :  { %v1047_v0 = vcombine.high %v1046_v1, %v1046_v1  ;;  %1127 = vst.sshfl [vmem:[#allocation9 + $0x1] sm:$0x1 pattern:$0x73625140] %v1046_v1 }
0x15bc   :  { %1128 = vst.sshfl [vmem:[#allocation9 + $0x3] sm:$0x1 pattern:$0x73625140] %v1047_v0 }
0x15bd   :  { %1460 = shalt.err (!%p1457_p0)
}
0x15be   :  { %s1461_s4 = scalar_lea.hbm %s1701_s2, 64 }
0x15bf   :  { %p1462_p1 = scmp.ne.s32.totalorder %s1701_s2, %s1461_s4  ;;  %p1465_p2 = scmp.lt.u32.totalorder %s1461_s4, %s1701_s2 }
0x15c1   :  { %p1467_p3 = pnand %p1465_p2, %p1462_p1 }
0x15c3   :  { %1470 = shalt.err (!%p1467_p3)
}
0x15c4   :  { %1088 = dma.vmem_to_hbm [thread:$0]  %s1083_s28, 64, %s1701_s2, [#allocation6], %s1480_s22, %s1480_s22, %s1481_s23  }
0x1622   :  { %v1068_v41 = vpop.permute.xlu1 %1067 }
0x1623   :  { %1071 = vst.msk [vmem:[#allocation2] sm:$0x3] %vm47_vm0, %v1068_v41 }
0x1624   :  { %1475 = dma.done.wait [#allocation6], 64  }
0x1625   :  { %1476 = vsyncadd [#allocation6], 4294967232 }
0x1626   :  { %1477 = dma.done.wait [#allocation11], 32  }
0x1627   :  { %1478 = vsyncadd [#allocation11], 4294967264 }
0x1628   :  { %1105 = vsyncpa [#allocation5], 1 }
0x1629   :  { %1106 = vsyncpa [#allocation8], 1 }
0x162a   :  { %1107 = vsyncpa [#allocation6], 1 }
0x162b   :  { %1108 = vsyncpa [#allocation11], 1 }

</bundles_post_ra>
